<compile_context>
chip_gen: v6e
topology: v6e:2x2x1
jax: 0.10.0
libtpu: 0.0.40
codegen_flags: <defaults>
</compile_context>

<pallas_src>
import jax
import jax.numpy as jnp
from jax.experimental import pallas as pl
from jax.experimental.pallas import tpu as pltpu


def _round_up(n, m):
    return ((n + m - 1) // m) * m


def listnet_kernel(x_ref, w1_ref, b1_ref, w2_ref, b2_ref, o_ref):
    # Hidden layer on the MXU: (tm, F) @ (F, H) -> (tm, H), f32 accumulation.
    h = jnp.dot(x_ref[...], w1_ref[...], preferred_element_type=jnp.float32)
    h = jnp.maximum(h + b1_ref[...].astype(jnp.float32), 0.0)
    # Dropout: identity at inference time.
    # Output layer: VPU multiply + lane reduction instead of a (tm, H) @ (H, 1)
    # MXU matmul whose single-column result wastes the MXU result path.  The
    # hidden activations are viewed as (tm//128, 128, H) -- a layout-trivial
    # split of the sublane dim (128 is a multiple of the 8-row tile) -- so the
    # reduced result lands directly in the lane-dense (tm//128, 128) out tile.
    rows, lanes = o_ref.shape                               # (tm // 128, 128)
    h3 = h.reshape(rows, lanes, h.shape[-1])
    w2_row = w2_ref[...].astype(jnp.float32).reshape(1, 1, -1)    # (1, 1, H)
    logits = jnp.sum(h3 * w2_row, axis=-1) + b2_ref[...].astype(jnp.float32)
    o_ref[...] = logits.astype(o_ref.dtype)


def _listnet_call(x, w1, b1_row, w2_row, b2_11, tm, n_tiles):
    """One pallas_call over `n_tiles` row tiles of `tm` rows each.

    Reads rows [0, n_tiles * tm) of x (x may be longer; the tail is simply not
    indexed) and returns a lane-dense (n_tiles, tm // 128, 128) f32 array whose
    row-major flattening gives the logits for those rows, in order.
    """
    F = x.shape[1]
    H = w1.shape[1]
    rows = n_tiles * tm
    cost = pl.CostEstimate(
        flops=2 * rows * F * H + 2 * rows * H,
        transcendentals=0,
        bytes_accessed=(rows * F * x.dtype.itemsize
                        + (F * H + 2 * H + 1) * w1.dtype.itemsize
                        + rows * 4),
    )
    return pl.pallas_call(
        listnet_kernel,
        out_shape=jax.ShapeDtypeStruct((n_tiles, tm // 128, 128), jnp.float32),
        grid_spec=pltpu.PrefetchScalarGridSpec(
            num_scalar_prefetch=0,
            grid=(n_tiles,),
            in_specs=[
                pl.BlockSpec((tm, F), lambda i: (i, 0)),   # x row tile (pipelined)
                pl.BlockSpec((F, H), lambda i: (0, 0)),    # W1 (resident)
                pl.BlockSpec((1, H), lambda i: (0, 0)),    # b1
                pl.BlockSpec((1, H), lambda i: (0, 0)),    # W2 as a row
                pl.BlockSpec((1, 1), lambda i: (0, 0)),    # b2
            ],
            # Leading (tile) dim squeezed; last two block dims equal the full
            # array dims, so any tm % 128 == 0 satisfies the (8,128) rule.
            out_specs=pl.BlockSpec((None, tm // 128, 128), lambda i: (i, 0, 0)),
        ),
        compiler_params=pltpu.CompilerParams(
            dimension_semantics=("parallel",),   # shards steps over v7x's 2 TCs
            vmem_limit_bytes=32 * 1024 * 1024,   # headroom for tm=4096 on v5e
        ),
        cost_estimate=cost,
    )(x, w1, b1_row, w2_row, b2_11)


def listnet_forward(x, w1, b1, w2, b2, *, tm=None, tm_max=4096):
    """x: (..., N, F). Returns logits (..., N, 1) float32."""
    F = x.shape[-1]
    H = w1.shape[1]
    # Fold leading "list" dims into the row axis: one launch scores them all.
    x2 = x.reshape(-1, F)
    N = x2.shape[0]

    b1_row = b1.reshape(1, H)
    w2_row = w2.reshape(1, H)    # (H, 1) weight used as a broadcast row in-kernel
    b2_11 = b2.reshape(1, 1)

    n128 = _round_up(max(N, 1), 128)
    if tm is None:
        if n128 <= tm_max:
            k = n128 // 128
            # Two equal full tiles when possible so both v7x TensorCores get
            # work; otherwise a single tile (v5e/v6e have one TC per chip).
            tm = n128 // 2 if (k >= 2 and k % 2 == 0) else n128
        else:
            tm = tm_max
    assert tm > 0 and tm % 128 == 0, "row tile must be a positive multiple of 128"

    if n128 <= tm_max:
        # Small/medium batch: single call; padding to the next 128 rows is
        # negligible at these sizes.
        if n128 % tm != 0:
            tm = n128                     # user tm that doesn't divide -> one tile
        if n128 != N:
            x2 = jnp.pad(x2, ((0, n128 - N), (0, 0)))
        out = _listnet_call(x2, w1, b1_row, w2_row, b2_11, tm, n128 // tm)
        logits = out.reshape(n128, 1)[:N]
    else:
        # Large batch: stream full tm-row tiles straight from the unpadded x
        # (no extra HBM read+write pass over x) and handle the <tm-row tail
        # with one small padded call.  Only the tiny (N,1) outputs get copied.
        full = N // tm
        tail_n = N - full * tm
        parts = []
        if full > 0:
            out_main = _listnet_call(x2, w1, b1_row, w2_row, b2_11, tm, full)
            parts.append(out_main.reshape(full * tm, 1))
        if tail_n > 0:
            tm_tail = _round_up(tail_n, 128)
            x_tail = x2[full * tm:]
            if tm_tail != tail_n:
                x_tail = jnp.pad(x_tail, ((0, tm_tail - tail_n), (0, 0)))
            out_tail = _listnet_call(x_tail, w1, b1_row, w2_row, b2_11, tm_tail, 1)
            parts.append(out_tail.reshape(tm_tail, 1)[:tail_n])
        logits = parts[0] if len(parts) == 1 else jnp.concatenate(parts, axis=0)

    return logits.reshape(x.shape[:-1] + (1,))


def init_params(key, num_input_features, hidden_dim):
    """Deterministic init mimicking PyTorch nn.Linear default (uniform +/- 1/sqrt(fan_in))."""
    k1, k2, k3, k4 = jax.random.split(key, 4)
    bound1 = 1.0 / jnp.sqrt(num_input_features)
    bound2 = 1.0 / jnp.sqrt(hidden_dim)
    w1 = jax.random.uniform(k1, (num_input_features, hidden_dim),
                            minval=-bound1, maxval=bound1, dtype=jnp.float32)
    b1 = jax.random.uniform(k2, (hidden_dim,),
                            minval=-bound1, maxval=bound1, dtype=jnp.float32)
    w2 = jax.random.uniform(k3, (hidden_dim, 1),
                            minval=-bound2, maxval=bound2, dtype=jnp.float32)
    b2 = jax.random.uniform(k4, (1,),
                            minval=-bound2, maxval=bound2, dtype=jnp.float32)
    return w1, b1, w2, b2


if __name__ == "__main__":
    num_input_features = 32
    hidden_dim = 64

    key = jax.random.PRNGKey(0)
    kx, kp = jax.random.split(key)
    w1, b1, w2, b2 = init_params(kp, num_input_features, hidden_dim)

    def ref_fn(xx):
        h = jnp.maximum(jnp.dot(xx, w1, precision=jax.lax.Precision.HIGHEST) + b1, 0.0)
        return jnp.dot(h, w2, precision=jax.lax.Precision.HIGHEST) + b2

    # 1) Small list (the spec's typical shape): 16 documents x 32 features.
    x_small = jax.random.normal(kx, (16, num_input_features), dtype=jnp.float32)
    logits = listnet_forward(x_small, w1, b1, w2, b2)
    jax.block_until_ready(logits)
    assert logits.shape == (16, 1)
    assert jnp.allclose(logits, ref_fn(x_small), atol=1e-4, rtol=1e-4)

    # 2) Mid-sized batch: exercises the 2-step grid (both v7x TensorCores).
    x_mid = jax.random.normal(jax.random.PRNGKey(1), (512, num_input_features),
                              dtype=jnp.float32)
    logits_mid = listnet_forward(x_mid, w1, b1, w2, b2)
    jax.block_until_ready(logits_mid)
    assert logits_mid.shape == (512, 1)
    assert jnp.allclose(logits_mid, ref_fn(x_mid), atol=1e-4, rtol=1e-4)

    # 3) Large-N streaming path (small tm_max keeps the test light): full tiles
    #    read straight from the unpadded x + one padded tail call.
    x_big = jax.random.normal(jax.random.PRNGKey(2), (2500, num_input_features),
                              dtype=jnp.float32)
    logits_big = listnet_forward(x_big, w1, b1, w2, b2, tm_max=1024)
    jax.block_until_ready(logits_big)
    assert logits_big.shape == (2500, 1)
    assert jnp.allclose(logits_big, ref_fn(x_big), atol=1e-4, rtol=1e-4)

    # 4) Multiple lists in one launch (leading dims folded into the row axis).
    x_lists = jax.random.normal(jax.random.PRNGKey(3), (3, 40, num_input_features),
                                dtype=jnp.float32)
    logits_lists = listnet_forward(x_lists, w1, b1, w2, b2)
    jax.block_until_ready(logits_lists)
    assert logits_lists.shape == (3, 40, 1)
    ref_lists = ref_fn(x_lists.reshape(-1, num_input_features)).reshape(3, 40, 1)
    assert jnp.allclose(logits_lists, ref_lists, atol=1e-4, rtol=1e-4)

    print("KERNEL_OK")
</pallas_src>

<mosaic_0001>
module attributes {stable_mosaic.version = 11 : i64} {
  func.func @listnet_kernel(%arg0: i32, %arg1: memref<128x32xf32, #tpu.memory_space<vmem>>, %arg2: memref<32x64xf32, #tpu.memory_space<vmem>>, %arg3: memref<1x64xf32, #tpu.memory_space<vmem>>, %arg4: memref<1x64xf32, #tpu.memory_space<vmem>>, %arg5: memref<1x1xf32, #tpu.memory_space<vmem>>, %arg6: memref<1x1x128xf32, #tpu.memory_space<vmem>>) attributes {dimension_semantics = [#tpu.dimension_semantics<parallel>], iteration_bounds = array<i64: 1>, scalar_prefetch = 0 : i64, scratch_operands = 0 : i64, tpu.core_type = #tpu.core_type<tc>, window_params = [{transform_indices = @transform_0, window_bounds = array<i64: 128, 32>}, {pipeline_mode = #tpu.pipeline_mode<synchronous>, transform_indices = @transform_1, window_bounds = array<i64: 32, 64>}, {pipeline_mode = #tpu.pipeline_mode<synchronous>, transform_indices = @transform_2, window_bounds = array<i64: 1, 64>}, {pipeline_mode = #tpu.pipeline_mode<synchronous>, transform_indices = @transform_3, window_bounds = array<i64: 1, 64>}, {pipeline_mode = #tpu.pipeline_mode<synchronous>, transform_indices = @transform_4, window_bounds = array<i64: 1, 1>}, {transform_indices = @transform_5, window_bounds = array<i64: 1, 1, 128>}]} {
    %c0 = arith.constant 0 : index
    %c0_0 = arith.constant 0 : index
    %0 = vector.load %arg1[%c0, %c0_0] : memref<128x32xf32, #tpu.memory_space<vmem>>, vector<128x32xf32>
    %c0_1 = arith.constant 0 : index
    %c0_2 = arith.constant 0 : index
    %1 = vector.load %arg2[%c0_1, %c0_2] : memref<32x64xf32, #tpu.memory_space<vmem>>, vector<32x64xf32>
    %cst = arith.constant dense<0.000000e+00> : vector<128x64xf32>
    %2 = tpu.matmul %0, %1, %cst {dimension_numbers = #tpu.dot_dimension_numbers<[1], [0], [0], [1], [0, 0, 1, 1], [], []>} : vector<128x32xf32>, vector<32x64xf32>, vector<128x64xf32> -> vector<128x64xf32>
    %c0_3 = arith.constant 0 : index
    %c0_4 = arith.constant 0 : index
    %3 = vector.load %arg3[%c0_3, %c0_4] : memref<1x64xf32, #tpu.memory_space<vmem>>, vector<1x64xf32>
    %4 = vector.broadcast %3 : vector<1x64xf32> to vector<128x64xf32>
    %5 = arith.addf %2, %4 : vector<128x64xf32>
    %cst_5 = arith.constant 0.000000e+00 : f32
    %6 = vector.broadcast %cst_5 : f32 to vector<128x64xf32>
    %7 = arith.maximumf %5, %6 : vector<128x64xf32>
    %8 = vector.shape_cast %7 : vector<128x64xf32> to vector<1x128x64xf32>
    %c0_6 = arith.constant 0 : index
    %c0_7 = arith.constant 0 : index
    %9 = vector.load %arg4[%c0_6, %c0_7] : memref<1x64xf32, #tpu.memory_space<vmem>>, vector<1x64xf32>
    %10 = vector.shape_cast %9 : vector<1x64xf32> to vector<1x1x64xf32>
    %11 = vector.broadcast %10 : vector<1x1x64xf32> to vector<1x128x64xf32>
    %12 = arith.mulf %8, %11 : vector<1x128x64xf32>
    %cst_8 = arith.constant dense<0.000000e+00> : vector<1x128xf32>
    %13 = vector.multi_reduction <add>, %12, %cst_8 [2] : vector<1x128x64xf32> to vector<1x128xf32>
    %c0_9 = arith.constant 0 : index
    %c0_10 = arith.constant 0 : index
    %14 = vector.load %arg5[%c0_9, %c0_10] : memref<1x1xf32, #tpu.memory_space<vmem>>, vector<1x1xf32>
    %15 = vector.broadcast %14 : vector<1x1xf32> to vector<1x128xf32>
    %16 = arith.addf %13, %15 : vector<1x128xf32>
    %c0_11 = arith.constant 0 : index
    %c0_12 = arith.constant 0 : index
    %c0_13 = arith.constant 0 : index
    %17 = vector.load %arg6[%c0_11, %c0_12, %c0_13] : memref<1x1x128xf32, #tpu.memory_space<vmem>>, vector<1x1x128xf32>
    %18 = vector.shape_cast %17 : vector<1x1x128xf32> to vector<1x128xf32>
    %19 = vector.shape_cast %16 : vector<1x128xf32> to vector<1x1x128xf32>
    tpu.vector_store %arg6[%c0_11, %c0_12, %c0_13], %19 {strides = array<i32>} : memref<1x1x128xf32, #tpu.memory_space<vmem>>, vector<1x1x128xf32>,
    return
  }
  func.func @transform_0(%arg0: i32) -> (i32, i32) {
    %c0_i32 = arith.constant 0 : i32
    %c0_i32_0 = arith.constant 0 : i32
    return %arg0, %c0_i32 : i32, i32
  }
  func.func @transform_1(%arg0: i32) -> (i32, i32) {
    %c0_i32 = arith.constant 0 : i32
    %c0_i32_0 = arith.constant 0 : i32
    %c0_i32_1 = arith.constant 0 : i32
    return %c0_i32, %c0_i32_0 : i32, i32
  }
  func.func @transform_2(%arg0: i32) -> (i32, i32) {
    %c0_i32 = arith.constant 0 : i32
    %c0_i32_0 = arith.constant 0 : i32
    %c0_i32_1 = arith.constant 0 : i32
    return %c0_i32, %c0_i32_0 : i32, i32
  }
  func.func @transform_3(%arg0: i32) -> (i32, i32) {
    %c0_i32 = arith.constant 0 : i32
    %c0_i32_0 = arith.constant 0 : i32
    %c0_i32_1 = arith.constant 0 : i32
    return %c0_i32, %c0_i32_0 : i32, i32
  }
  func.func @transform_4(%arg0: i32) -> (i32, i32) {
    %c0_i32 = arith.constant 0 : i32
    %c0_i32_0 = arith.constant 0 : i32
    %c0_i32_1 = arith.constant 0 : i32
    return %c0_i32, %c0_i32_0 : i32, i32
  }
  func.func @transform_5(%arg0: i32) -> (i32, i32, i32) {
    %c0_i32 = arith.constant 0 : i32
    %c0_i32_0 = arith.constant 0 : i32
    %c0_i32_1 = arith.constant 0 : i32
    return %arg0, %c0_i32, %c0_i32_0 : i32, i32, i32
  }
}

</mosaic_0001>

<bundles_post_ra>
// kernel: tpu_custom_call.1
= control target key start
LH: loop header
LB: loop body
LE: loop exit
PB: predicated region body
PF: predicated region fallthrough
CT: control target
= control target key end

     0   :  { %s841_s0 = inlined_call_operand.vmem [shape: f32[128,32], index: 0, kind: input, shape index: {}]   ;;  %s842_s1 = inlined_call_operand.vmem [shape: f32[32,64], index: 1, kind: input, shape index: {}]   ;;  %s843_s2 = inlined_call_operand.vmem [shape: f32[1,64], index: 2, kind: input, shape index: {}]   ;;  %s844_s3 = inlined_call_operand.vmem [shape: f32[1,64], index: 3, kind: input, shape index: {}]   ;;  %s845_s4 = inlined_call_operand.<no memory space> [shape: f32[1,1], index: 4, kind: input, shape index: {}]   ;;  %s846_s5 = inlined_call_operand.hbm [shape: f32[1,1,128], index: 5, kind: output, shape index: {}]  }
   0x1   :  { %v10_v0 = vstv %s845_s4 }
   0x2   :  { %11 = vst [vmem:[#allocation2] sm:$0x1] %v10_v0 }
   0x3   :  { %v42_v1 = vld [vmem:[%s842_s1 + $0x18] sm:$0xff]  ;;  %v41_v2 = vld [vmem:[%s842_s1 + $0x10] sm:$0xff]  ;;  %vm50_vm0 = vcmask 261120   ;;  %v23_v3 = vld [vmem:[%s841_s0] sm:$0xff] }
   0x4   :  { %539 = vmatprep.subr.mxu0 %v42_v1  ;;  %571 = vmatprep.subr.mxu1 %v42_v1  ;;  %v40_v4 = vld [vmem:[%s842_s1 + $0x8] sm:$0xff]  ;;  %v39_v5 = vld [vmem:[%s842_s1] sm:$0xff] }
   0x5   :  { %540 = vmatpush3.msra.mxu0 %v42_v1  ;;  %575 = vmatpush3.msra.mxu1 %v42_v1  ;;  %v24_v6 = vld [vmem:[%s841_s0 + $0x8] sm:$0xff] }
   0x6   :  { %541 = vmatprep.subr.mxu0 %v41_v2  ;;  %547 = vmatprep.mubr.msk.f32.mxu0 %vm50_vm0, %v23_v3 }
   0x7   :  { %542 = vmatpush3.msra.mxu0 %v41_v2  ;;  %572 = vmatprep.subr.mxu1 %v41_v2 }
   0x8   :  { %543 = vmatprep.subr.mxu0 %v40_v4  ;;  %576 = vmatpush3.msra.mxu1 %v41_v2 }
   0x9   :  { %544 = vmatpush3.msra.mxu0 %v40_v4  ;;  %573 = vmatprep.subr.mxu1 %v40_v4 }
   0xa   :  { %12 = vsyncpa [#allocation4], 0  ;;  %545 = vmatprep.subr.mxu0 %v39_v5  ;;  %577 = vmatpush3.msra.mxu1 %v40_v4  ;;  %v25_v7 = vld [vmem:[%s841_s0 + $0x10] sm:$0xff]  ;;  %v31_v8 = vld [vmem:[%s841_s0 + $0x40] sm:$0xff]  ;;  %v605_v21 = vmov 0   ;;  %vm283_vm1 = vcmask 523264  }
   0xb   :  { %546 = vmatpush3.msra.mxu0 %v39_v5  ;;  %574 = vmatprep.subr.mxu1 %v39_v5  ;;  %v32_v9 = vld [vmem:[%s841_s0 + $0x48] sm:$0xff]  ;;  %v33_v10 = vld [vmem:[%s841_s0 + $0x50] sm:$0xff]  ;;  %v26_v11 = vld [vmem:[%s841_s0 + $0x18] sm:$0xff]  ;;  %vm385_vm2 = vcmask 130112   ;;  %vm392_vm3 = vcmask 195712   ;;  %vm399_vm4 = vcmask 261312  }
   0xc   :  { %548 = vmatmul.mubr.msk.f32.vlgmr.msra.gmra.mxu0 %vm50_vm0, %v24_v6  ;;  %578 = vmatpush3.msra.mxu1 %v39_v5  ;;  %v27_v12 = vld [vmem:[%s841_s0 + $0x20] sm:$0xff]  ;;  %v34_v13 = vld [vmem:[%s841_s0 + $0x58] sm:$0xff]  ;;  %v28_v15 = vld [vmem:[%s841_s0 + $0x28] sm:$0xff]  ;;  %vm406_vm5 = vcmask 326912   ;;  %vm413_vm6 = vcmask 392512   ;;  %vm420_vm7 = vcmask 458112  }
   0xd   :  { %550 = vmatprep.mubr.msk.f32.mxu0 %vm50_vm0, %v25_v7  ;;  %559 = vmatprep.mubr.msk.f32.mxu1 %vm50_vm0, %v31_v8  ;;  %v35_v14 = vld [vmem:[%s841_s0 + $0x60] sm:$0xff]  ;;  %v29_v16 = vld [vmem:[%s841_s0 + $0x30] sm:$0xff]  ;;  %v36_v17 = vld [vmem:[%s841_s0 + $0x68] sm:$0xff]  ;;  %vm427_vm8 = vcmask 523712   ;;  %vm434_vm9 = vcmask 589312   ;;  %vm441_vm10 = vcmask 654912  }
   0xe   :  { %560 = vmatmul.mubr.msk.f32.vlgmr.msra.gmra.mxu1 %vm50_vm0, %v32_v9  ;;  %v37_v18 = vld [vmem:[%s841_s0 + $0x70] sm:$0xff]  ;;  %v30_v19 = vld [vmem:[%s841_s0 + $0x38] sm:$0xff]  ;;  %581 = vset.pattern.permute.xlu1 %v605_v21  ;;  %v719_v22 = vld [vmem:[%s843_s2] ss:$0 sm:$0xff]  ;;  %vm448_vm11 = vcmask 720512   ;;  %vm455_vm12 = vcmask 786112  }
   0xf   :  { %562 = vmatprep.mubr.msk.f32.mxu1 %vm50_vm0, %v33_v10  ;;  %v38_v20 = vld [vmem:[%s841_s0 + $0x78] sm:$0xff]  ;;  %582 = vset.pattern.permute.xlu0 %v605_v21  ;;  %v726_v29 = vld [vmem:[%s844_s3] ss:$0 sm:$0xff]  ;;  %vm462_vm13 = vcmask 851712   ;;  %vm469_vm14 = vcmask 917312   ;;  %vm476_vm15 = vcmask 982912  }
  0x10   :  { %551 = vmatmul.mubr.msk.f32.gmra.mxu0 %vm50_vm0, %v26_v11  ;;  %s606_s2 = smov [#allocation3]  }
  0x11   :  { %553 = vmatprep.mubr.msk.f32.mxu0 %vm50_vm0, %v27_v12  ;;  %s493_s3 = sshll.u32 %s606_s2, 4  ;;  %s494_s3 = int_to_ptr.vmem [resolvable:$true] %s493_s3 }
  0x12   :  { %563 = vmatmul.mubr.msk.f32.gmra.mxu1 %vm50_vm0, %v34_v13  ;;  %s583_s1 = scalar_lea.vmem %s494_s3, 16  ;;  %s587_s10 = scalar_lea.vmem %s494_s3, 32 }
  0x13   :  { %565 = vmatprep.mubr.msk.f32.mxu1 %vm50_vm0, %v35_v14  ;;  %p584_p0 = scmp.ne.s32.totalorder %s494_s3, %s583_s1  ;;  %p588_p1 = scmp.lt.s32.totalorder %s494_s3, %s494_s3 }
  0x14   :  { %554 = vmatmul.mubr.msk.f32.gmra.mxu0 %vm50_vm0, %v28_v15  ;;  %p589_p2 = scmp.lt.s32.totalorder %s587_s10, %s583_s1 }
  0x15   :  { %556 = vmatprep.mubr.msk.f32.mxu0 %vm50_vm0, %v29_v16 }
  0x16   :  { %566 = vmatmul.mubr.msk.f32.gmra.mxu1 %vm50_vm0, %v36_v17  ;;  %p590_p3 = por %p589_p2, %p588_p1 }
  0x17   :  { %568 = vmatprep.mubr.msk.f32.mxu1 %vm50_vm0, %v37_v18 }
  0x18   :  { %557 = vmatmul.mubr.msk.f32.gmra.mxu0 %vm50_vm0, %v30_v19  ;;  %p591_p4 = pnand %p590_p3, %p584_p0 }
  0x1a   :  { %569 = vmatmul.mubr.msk.f32.gmra.mxu1 %vm50_vm0, %v38_v20  ;;  %vm483_vm0 = vcmask 1048512  }
  0xcc   :  { %v549_v23 = vpop.f32.mrf.mxu0 }
  0xcd   :  { %v171_v24 = vadd.f32 %v549_v23, %v719_v22 }
  0xce   :  { %v165_v25 = vpop.f32.mrf.mxu0  ;;  %v561_v26 = vpop.f32.mrf.mxu1 }
  0xcf   :  { %v245_v27 = vmax.f32 %v171_v24, 0.0  ;;  %v166_v28 = vadd.f32 %v719_v22, %v165_v25  ;;  %v211_v36 = vadd.f32 %v561_v26, %v719_v22 }
  0xd0   :  { %v552_v30 = vpop.f32.mrf.mxu0  ;;  %v205_v31 = vpop.f32.mrf.mxu1 }
  0xd1   :  { %v244_v32 = vmax.f32 %v166_v28, 0.0  ;;  %v181_v33 = vadd.f32 %v552_v30, %v719_v22  ;;  %v206_v34 = vadd.f32 %v719_v22, %v205_v31  ;;  %v268_v37 = vmul.f32 %v726_v29, %v245_v27  ;;  %v332_v30 = vld [vmem:[#allocation2] sm:$0x1] }
  0xd2   :  { %v175_v35 = vpop.f32.mrf.mxu0  ;;  %v564_v38 = vpop.f32.mrf.mxu1  ;;  %v253_v50 = vmax.f32 %v211_v36, 0.0 }
  0xd3   :  { %v247_v39 = vmax.f32 %v181_v33, 0.0  ;;  %v176_v40 = vadd.f32 %v719_v22, %v175_v35  ;;  %v252_v41 = vmax.f32 %v206_v34, 0.0  ;;  %v287_v42 = vsel %vm283_vm1, %v268_v37, 0.0 }
  0xd4   :  { %v555_v43 = vpop.f32.mrf.mxu0  ;;  %v267_v44 = vmul.f32 %v726_v29, %v244_v32  ;;  %v221_v45 = vadd.f32 %v564_v38, %v719_v22  ;;  %v215_v46 = vpop.f32.mrf.mxu1  ;;  %288 = vadd.xlane.f32.xlu0 %v287_v42  ;;  %v276_v0 = vmul.f32 %v726_v29, %v253_v50 }
  0xd5   :  { %v246_v47 = vmax.f32 %v176_v40, 0.0  ;;  %v191_v48 = vadd.f32 %v555_v43, %v719_v22  ;;  %v270_v49 = vmul.f32 %v726_v29, %v247_v39  ;;  %v216_v52 = vadd.f32 %v719_v22, %v215_v46 }
  0xd6   :  { %v255_v51 = vmax.f32 %v221_v45, 0.0  ;;  %v275_v53 = vmul.f32 %v726_v29, %v252_v41  ;;  %v567_v57 = vpop.f32.mrf.mxu1  ;;  %v284_v58 = vsel %vm283_vm1, %v267_v44, 0.0  ;;  %v185_v60 = vpop.f32.mrf.mxu0  ;;  %v311_v6 = vsel %vm283_vm1, %v276_v0, 0.0 }
  0xd7   :  { %v249_v54 = vmax.f32 %v191_v48, 0.0  ;;  %v293_v55 = vsel %vm283_vm1, %v270_v49, 0.0  ;;  %v269_v56 = vmul.f32 %v726_v29, %v246_v47  ;;  %v254_v62 = vmax.f32 %v216_v52, 0.0 }
  0xd8   :  { %294 = vadd.xlane.f32.xlu1 %v293_v55  ;;  %v278_v59 = vmul.f32 %v726_v29, %v255_v51  ;;  %285 = vadd.xlane.f32.xlu0 %v284_v58  ;;  %v308_v63 = vsel %vm283_vm1, %v275_v53, 0.0  ;;  %v225_v3 = vpop.f32.mrf.mxu1  ;;  %v186_v4 = vadd.f32 %v719_v22, %v185_v60  ;;  %v558_v9 = vpop.f32.mrf.mxu0  ;;  %v231_v21 = vadd.f32 %v567_v57, %v719_v22 }
  0xd9   :  { %v272_v61 = vmul.f32 %v726_v29, %v249_v54  ;;  %v290_v2 = vsel %vm283_vm1, %v269_v56, 0.0  ;;  %v226_v7 = vadd.f32 %v719_v22, %v225_v3  ;;  %v277_v8 = vmul.f32 %v726_v29, %v254_v62 }
  0xda   :  { %v317_v1 = vsel %vm283_vm1, %v278_v59, 0.0  ;;  %v248_v10 = vmax.f32 %v186_v4, 0.0  ;;  %v201_v13 = vadd.f32 %v558_v9, %v719_v22  ;;  %v195_v14 = vpop.f32.mrf.mxu0  ;;  %v570_v19 = vpop.f32.mrf.mxu1  ;;  %v257_v27 = vmax.f32 %v231_v21, 0.0 }
  0xdb   :  { %v299_v5 = vsel %vm283_vm1, %v272_v61, 0.0  ;;  %v256_v11 = vmax.f32 %v226_v7, 0.0  ;;  %v314_v12 = vsel %vm283_vm1, %v277_v8, 0.0  ;;  %v196_v17 = vadd.f32 %v719_v22, %v195_v14 }
  0xdc   :  { %291 = vadd.xlane.f32.xlu1 %v290_v2  ;;  %309 = vadd.xlane.f32.xlu0 %v308_v63  ;;  %v271_v15 = vmul.f32 %v726_v29, %v248_v10  ;;  %v251_v16 = vmax.f32 %v201_v13, 0.0  ;;  %v235_v26 = vpop.f32.mrf.mxu1  ;;  %v241_v33 = vadd.f32 %v570_v19, %v719_v22  ;;  %v280_v36 = vmul.f32 %v726_v29, %v257_v27 }
  0xdd   :  { %v279_v18 = vmul.f32 %v726_v29, %v256_v11  ;;  %v250_v23 = vmax.f32 %v196_v17, 0.0  ;;  %v236_v31 = vadd.f32 %v719_v22, %v235_v26  ;;  %v338_v48 = vlaneseq }
  0xde   :  { %v296_v20 = vsel %vm283_vm1, %v271_v15, 0.0  ;;  %v274_v25 = vmul.f32 %v726_v29, %v251_v16  ;;  %v259_v37 = vmax.f32 %v241_v33, 0.0  ;;  %v323_v38 = vsel %vm283_vm1, %v280_v36, 0.0 }
  0xdf   :  { %v320_v24 = vsel %vm283_vm1, %v279_v18, 0.0  ;;  %v273_v32 = vmul.f32 %v726_v29, %v250_v23  ;;  %v258_v34 = vmax.f32 %v236_v31, 0.0  ;;  %v778_v51 = vshrl.u32 %v338_v48, 7 }
  0xe0   :  { %300 = vadd.xlane.f32.xlu1 %v299_v5  ;;  %312 = vadd.xlane.f32.xlu0 %v311_v6  ;;  %v305_v28 = vsel %vm283_vm1, %v274_v25, 0.0  ;;  %v282_v41 = vmul.f32 %v726_v29, %v259_v37  ;;  %v781_v52 = vand.u32 127, %v338_v48 }
  0xe1   :  { %v302_v35 = vsel %vm283_vm1, %v273_v32, 0.0  ;;  %v281_v39 = vmul.f32 %v726_v29, %v258_v34  ;;  %v340_v29 = vsub.s32 0, %v778_v51 }
  0xe2   :  { %v329_v42 = vsel %vm283_vm1, %v282_v41, 0.0  ;;  %v380_v56 = vadd.s32 4294967288, %v781_v52  ;;  %v387_v58 = vadd.s32 4294967280, %v781_v52  ;;  %v378_v61 = vsub.s32 %v781_v52, %v778_v51 }
  0xe3   :  { %v326_v40 = vsel %vm283_vm1, %v281_v39, 0.0  ;;  %v394_v3 = vadd.s32 4294967272, %v781_v52  ;;  %v401_v5 = vadd.s32 4294967264, %v781_v52  ;;  %v415_v13 = vadd.s32 4294967248, %v781_v52 }
  0xe4   :  { %315 = vadd.xlane.f32.xlu0 %v314_v12  ;;  %v383_v62 = vsub.s32 %v380_v56, %v778_v51  ;;  %v390_v0 = vsub.s32 %v387_v58, %v778_v51  ;;  %v408_v12 = vadd.s32 4294967256, %v781_v52  ;;  %v422_v23 = vadd.s32 4294967240, %v781_v52 }
  0xe5   :  { %v397_v9 = vsub.s32 %v394_v3, %v778_v51  ;;  %v404_v10 = vsub.s32 %v401_v5, %v778_v51  ;;  %v418_v19 = vsub.s32 %v415_v13, %v778_v51  ;;  %v429_v26 = vadd.s32 4294967232, %v781_v52 }
  0xe6   :  { %v411_v18 = vsub.s32 %v408_v12, %v778_v51  ;;  %v436_v33 = vadd.s32 4294967224, %v781_v52 }
  0xe7   :  { %v432_v36 = vsub.s32 %v429_v26, %v778_v51 }
  0xe8   :  { %297 = vadd.xlane.f32.xlu0 %v296_v20  ;;  %v439_v41 = vsub.s32 %v436_v33, %v778_v51 }
  0xec   :  { %321 = vadd.xlane.f32.xlu0 %v320_v24 }
  0xf0   :  { %306 = vadd.xlane.f32.xlu0 %v305_v28 }
  0xf1   :  { %335 = vperm.xlu1 %581, %v332_v30   ;;  %v425_v30 = vsub.s32 %v422_v23, %v778_v51 }
  0xf4   :  { %303 = vadd.xlane.f32.xlu0 %v302_v35 }
  0xf8   :  { %324 = vadd.xlane.f32.xlu0 %v323_v38  ;;  %v443_v38 = vadd.s32 4294967216, %v781_v52 }
  0xfa   :  { %v446_v48 = vsub.s32 %v443_v38, %v778_v51 }
  0xfc   :  { %327 = vadd.xlane.f32.xlu0 %v326_v40 }
 0x100   :  { %330 = vadd.xlane.f32.xlu0 %v329_v42 }
 0x115   :  { %318 = vadd.xlane.f32.xlu1 %v317_v1 }
 0x15d   :  { %v289_v22 = vpop.xlane.xlu0 %288 }
 0x161   :  { %v286_v43 = vpop.xlane.xlu0 %285  ;;  %v295_v45 = vpop.xlane.xlu1 %294 }
 0x165   :  { %v310_v44 = vpop.xlane.xlu0 %309  ;;  %v292_v47 = vpop.xlane.xlu1 %291 }
 0x169   :  { %v774_v46 = vpop.xlane.xlu0 %312  ;;  %v301_v50 = vpop.xlane.xlu1 %300 }
 0x16d   :  { %v776_v49 = vpop.xlane.xlu0 %315  ;;  %v336_v54 = vpop.permute.xlu1 %335 }
 0x16e   :  { %v783_v55 = vrot.slane %v336_v54, %v340_v29  ;;  %v478_v54 = vadd.s32 4294967176, %v781_v52 }
 0x170   :  { %v342_v59 = vadd.f32 %v783_v55, %v286_v43  ;;  %v343_v60 = vadd.f32 %v783_v55, %v289_v22  ;;  %v344_v63 = vadd.f32 %v783_v55, %v292_v47  ;;  %v345_v7 = vadd.f32 %v783_v55, %v295_v45 }
 0x171   :  { %v298_v53 = vpop.xlane.xlu0 %297  ;;  %v347_v24 = vadd.f32 %v783_v55, %v301_v50  ;;  %v350_v35 = vadd.f32 %v783_v55, %v310_v44  ;;  %v450_v22 = vadd.s32 4294967208, %v781_v52  ;;  %v351_v43 = vadd.f32 %v783_v55, %v774_v46 }
 0x172   :  { %v379_v1 = vrot.slane %v342_v59, %v378_v61  ;;  %v384_v2 = vrot.slane %v343_v60, %v383_v62  ;;  %v391_v6 = vrot.slane %v344_v63, %v390_v0  ;;  %v346_v11 = vadd.f32 %v783_v55, %v298_v53 }
 0x173   :  { %v398_v16 = vrot.slane %v345_v7, %v397_v9  ;;  %v412_v32 = vrot.slane %v347_v24, %v411_v18  ;;  %v457_v45 = vadd.s32 4294967200, %v781_v52  ;;  %v433_v44 = vrot.slane %v350_v35, %v432_v36 }
 0x174   :  { %v386_v8 = vsel %vm385_vm2, %v384_v2, %v379_v1  ;;  %v405_v17 = vrot.slane %v346_v11, %v404_v10  ;;  %v464_v47 = vadd.s32 4294967192, %v781_v52  ;;  %v352_v50 = vadd.f32 %v783_v55, %v776_v49 }
 0x175   :  { %v786_v57 = vpop.xlane.xlu0 %321  ;;  %v393_v15 = vsel %vm392_vm3, %v391_v6, %v386_v8  ;;  %v471_v53 = vadd.s32 4294967184, %v781_v52  ;;  %v453_v56 = vsub.s32 %v450_v22, %v778_v51  ;;  %v440_v58 = vrot.slane %v351_v43, %v439_v41 }
 0x176   :  { %v400_v21 = vsel %vm399_vm4, %v398_v16, %v393_v15  ;;  %v460_v46 = vsub.s32 %v457_v45, %v778_v51  ;;  %v354_v59 = vadd.f32 %v783_v55, %v786_v57  ;;  %v467_v60 = vsub.s32 %v464_v47, %v778_v51 }
 0x177   :  { %v407_v25 = vsel %vm406_vm5, %v405_v17, %v400_v21  ;;  %v447_v1 = vrot.slane %v352_v50, %v446_v48  ;;  %v474_v52 = vsub.s32 %v471_v53, %v778_v51  ;;  %v481_v3 = vsub.s32 %v478_v54, %v778_v51 }
 0x178   :  { %v414_v34 = vsel %vm413_vm6, %v412_v32, %v407_v25  ;;  %v461_v5 = vrot.slane %v354_v59, %v460_v46 }
 0x179   :  { %v307_v4 = vpop.xlane.xlu0 %306 }
 0x17a   :  { %v349_v31 = vadd.f32 %v783_v55, %v307_v4 }
 0x17c   :  { %v426_v39 = vrot.slane %v349_v31, %v425_v30 }
 0x17d   :  { %v304_v14 = vpop.xlane.xlu0 %303 }
 0x17e   :  { %v348_v20 = vadd.f32 %v783_v55, %v304_v14 }
 0x180   :  { %v419_v27 = vrot.slane %v348_v20, %v418_v19 }
 0x181   :  { %v325_v28 = vpop.xlane.xlu0 %324 }
 0x182   :  { %v421_v37 = vsel %vm420_vm7, %v419_v27, %v414_v34  ;;  %v355_v49 = vadd.f32 %v783_v55, %v325_v28 }
 0x183   :  { %v428_v42 = vsel %vm427_vm8, %v426_v39, %v421_v37 }
 0x184   :  { %v435_v29 = vsel %vm434_vm9, %v433_v44, %v428_v42  ;;  %v468_v7 = vrot.slane %v355_v49, %v467_v60 }
 0x185   :  { %v328_v40 = vpop.xlane.xlu0 %327  ;;  %v442_v0 = vsel %vm441_vm10, %v440_v58, %v435_v29 }
 0x186   :  { %v356_v2 = vadd.f32 %v783_v55, %v328_v40  ;;  %v449_v6 = vsel %vm448_vm11, %v447_v1, %v442_v0 }
 0x188   :  { %v475_v9 = vrot.slane %v356_v2, %v474_v52 }
 0x189   :  { %v331_v61 = vpop.xlane.xlu0 %330 }
 0x18a   :  { %v357_v57 = vadd.f32 %v783_v55, %v331_v61 }
 0x18c   :  { %v482_v11 = vrot.slane %v357_v57, %v481_v3 }
 0x19e   :  { %v319_v62 = vpop.xlane.xlu1 %318 }
 0x19f   :  { %v353_v63 = vadd.f32 %v783_v55, %v319_v62 }
 0x1a1   :  { %v454_v4 = vrot.slane %v353_v63, %v453_v56 }
 0x1a3   :  { %v456_v8 = vsel %vm455_vm12, %v454_v4, %v449_v6 }
 0x1a4   :  { %v463_v10 = vsel %vm462_vm13, %v461_v5, %v456_v8 }
 0x1a5   :  { %v470_v12 = vsel %vm469_vm14, %v468_v7, %v463_v10 }
 0x1a6   :  { %v477_v13 = vsel %vm476_vm15, %v475_v9, %v470_v12 }
 0x1a7   :  { %v484_v51 = vsel %vm483_vm0, %v482_v11, %v477_v13 }
 0x1a8   :  { %486 = vst [vmem:[#allocation3] sm:$0x1] %v484_v51 }
 0x1a9   :  { %594 = shalt.err (!%p591_p4)
}
 0x1aa   :  { %496 = dma.vmem_to_hbm [thread:$0]  %s494_s3, 16, %s846_s5, [#allocation4]  }
 0x1ab   :  { %603 = dma.done.wait [#allocation4], 16  }
 0x1ac   :  { %604 = vsyncadd [#allocation4], 4294967280 }
 0x1ad   :  { %500 = vsyncpa [#allocation4], 1 }

</bundles_post_ra>
